<compile_context>
chip_gen: v6e
topology: v6e:2x2x1
jax: 0.10.0
libtpu: 0.0.40
codegen_flags: <defaults>
</compile_context>

<pallas_src>
import functools

import jax
import jax.numpy as jnp
from jax.experimental import pallas as pl
from jax.experimental.pallas import tpu as pltpu


PIXEL_MEAN = jnp.array([123.675, 116.28, 103.53], jnp.float32)
PIXEL_STD = jnp.array([58.395, 57.12, 57.375], jnp.float32)

CFG = dict(
    input_size=(64, 64),   # self.input_size (kept small)
    patch=16,              # ViT patch-embed conv kernel/stride
    embed_dim=32,
    depth=2,
    num_heads=2,
    mlp_ratio=4,
    out_chans=32,          # neck output channels
)


# ----------------------------- in-kernel helpers ----------------------------

def _ln(x, g, b, eps):
    """LayerNorm over the last (channel) axis, f32 stats."""
    mu = jnp.mean(x, axis=-1, keepdims=True)
    xc = x - mu
    var = jnp.mean(xc * xc, axis=-1, keepdims=True)
    return xc * jax.lax.rsqrt(var + eps) * g + b


# ----------------------------- Pallas kernels ------------------------------

def _patch_embed_kernel(p_ref, w_ref, b_ref, pe_ref, o_ref):
    # patches @ W' + b' + pos_embed (normalization already folded into W'/b')
    o_ref[...] = (jnp.dot(p_ref[...], w_ref[...],
                          preferred_element_type=jnp.float32)
                  + b_ref[...] + pe_ref[...])


def _block_kernel(tok_ref, ln1_g_ref, ln1_b_ref, qkv_w_ref, qkv_b_ref,
                  proj_w_ref, proj_b_ref, ln2_g_ref, ln2_b_ref,
                  fc1_w_ref, fc1_b_ref, fc2_w_ref, fc2_b_ref, o_ref,
                  *, num_heads, head_dim, eps):
    # One full transformer block, tokens resident in VMEM throughout.
    x = tok_ref[...]                                       # (N, d) f32
    h = _ln(x, ln1_g_ref[...], ln1_b_ref[...], eps)
    hb = h.astype(jnp.bfloat16)                            # MXU-friendly
    scale = head_dim ** -0.5

    acc = None
    for hh in range(num_heads):
        q = jnp.dot(hb, qkv_w_ref[hh],
                    preferred_element_type=jnp.float32) + qkv_b_ref[hh]
        k = jnp.dot(hb, qkv_w_ref[num_heads + hh],
                    preferred_element_type=jnp.float32) + qkv_b_ref[num_heads + hh]
        v = jnp.dot(hb, qkv_w_ref[2 * num_heads + hh],
                    preferred_element_type=jnp.float32) + qkv_b_ref[2 * num_heads + hh]
        s = jnp.dot(q * scale, k.T, preferred_element_type=jnp.float32)
        s = s - jnp.max(s, axis=-1, keepdims=True)
        p = jnp.exp(s)
        p = p * pl.reciprocal(jnp.sum(p, axis=-1, keepdims=True), approx=True)
        oh = jnp.dot(p, v, preferred_element_type=jnp.float32)        # (N, dh)
        # per-head slice of the output projection -> lane-dense (N, d) partials
        contrib = jnp.dot(oh.astype(jnp.bfloat16), proj_w_ref[hh],
                          preferred_element_type=jnp.float32)
        acc = contrib if acc is None else acc + contrib

    tok1 = x + acc + proj_b_ref[...]                       # residual #1

    h2 = _ln(tok1, ln2_g_ref[...], ln2_b_ref[...], eps)
    m = jnp.dot(h2.astype(jnp.bfloat16), fc1_w_ref[...],
                preferred_element_type=jnp.float32) + fc1_b_ref[...]
    m = jax.nn.gelu(m, approximate=True)
    y = jnp.dot(m.astype(jnp.bfloat16), fc2_w_ref[...],
                preferred_element_type=jnp.float32) + fc2_b_ref[...]
    o_ref[...] = tok1 + y                                  # residual #2


def _neck_kernel(tok_ref, w1_ref, g1_ref, b1_ref, w2_ref, g2_ref, b2_ref, o_ref,
                 *, hp, wp, oc, eps):
    # 1x1 conv -> LayerNorm2d -> 3x3 conv (zero pad) -> LayerNorm2d, all in VMEM.
    n = hp * wp
    x = tok_ref[...]                                       # (N, d)
    y = jnp.dot(x.astype(jnp.bfloat16), w1_ref[...],
                preferred_element_type=jnp.float32)
    y = _ln(y, g1_ref[...], b1_ref[...], eps)              # (N, oc)

    # 3x3 conv as 9 shifted taps; shifts realized as constant selection
    # matrices built from iota (robust lowering: iota/compare/select + MXU).
    t_out = jax.lax.broadcasted_iota(jnp.int32, (n, n), 0)   # output token id
    t_in = jax.lax.broadcasted_iota(jnp.int32, (n, n), 1)    # input token id
    row = t_out // wp
    col = t_out % wp

    acc = None
    tap = 0
    for di in (-1, 0, 1):
        for dj in (-1, 0, 1):
            off = di * wp + dj
            if off == 0:
                z = y
            else:
                sel = ((t_in == t_out + off) &
                       (row + di >= 0) & (row + di < hp) &
                       (col + dj >= 0) & (col + dj < wp))
                shift = jnp.where(sel, 1.0, 0.0)
                z = jnp.dot(shift, y, preferred_element_type=jnp.float32)
            part = jnp.dot(z.astype(jnp.bfloat16), w2_ref[tap],
                           preferred_element_type=jnp.float32)
            acc = part if acc is None else acc + part
            tap += 1

    o_ref[...] = _ln(acc, g2_ref[...], b2_ref[...], eps)


# ----------------------------- pallas_call wrappers -------------------------

def patch_embed(patches, w, bias, pos_embed, n_tok):
    m, kdim = patches.shape
    d = w.shape[1]
    b = m // n_tok
    return pl.pallas_call(
        _patch_embed_kernel,
        out_shape=jax.ShapeDtypeStruct((m, d), jnp.float32),
        grid=(b,),
        in_specs=[pl.BlockSpec((n_tok, kdim), lambda i: (i, 0)),
                  pl.BlockSpec((kdim, d), lambda i: (0, 0)),
                  pl.BlockSpec((1, d), lambda i: (0, 0)),
                  pl.BlockSpec((n_tok, d), lambda i: (0, 0))],
        out_specs=pl.BlockSpec((n_tok, d), lambda i: (i, 0)),
        compiler_params=pltpu.CompilerParams(dimension_semantics=("parallel",)),
    )(patches, w, bias, pos_embed)


def transformer_block(tok, blk, n_tok, num_heads, head_dim):
    m, d = tok.shape
    b = m // n_tok
    mlp = blk["fc1_w"].shape[1]
    three_nh = 3 * num_heads
    kernel = functools.partial(_block_kernel, num_heads=num_heads,
                               head_dim=head_dim, eps=1e-6)
    return pl.pallas_call(
        kernel,
        out_shape=jax.ShapeDtypeStruct((m, d), jnp.float32),
        grid=(b,),
        in_specs=[
            pl.BlockSpec((n_tok, d), lambda i: (i, 0)),
            pl.BlockSpec((1, d), lambda i: (0, 0)),
            pl.BlockSpec((1, d), lambda i: (0, 0)),
            pl.BlockSpec((three_nh, d, head_dim), lambda i: (0, 0, 0)),
            pl.BlockSpec((three_nh, 1, head_dim), lambda i: (0, 0, 0)),
            pl.BlockSpec((num_heads, head_dim, d), lambda i: (0, 0, 0)),
            pl.BlockSpec((1, d), lambda i: (0, 0)),
            pl.BlockSpec((1, d), lambda i: (0, 0)),
            pl.BlockSpec((1, d), lambda i: (0, 0)),
            pl.BlockSpec((d, mlp), lambda i: (0, 0)),
            pl.BlockSpec((1, mlp), lambda i: (0, 0)),
            pl.BlockSpec((mlp, d), lambda i: (0, 0)),
            pl.BlockSpec((1, d), lambda i: (0, 0)),
        ],
        out_specs=pl.BlockSpec((n_tok, d), lambda i: (i, 0)),
        compiler_params=pltpu.CompilerParams(dimension_semantics=("parallel",)),
    )(tok, blk["ln1_g"], blk["ln1_b"], blk["qkv_w3"], blk["qkv_b3"],
      blk["proj_w3"], blk["proj_b"], blk["ln2_g"], blk["ln2_b"],
      blk["fc1_w"], blk["fc1_b"], blk["fc2_w"], blk["fc2_b"])


def neck(tok, nparams, hp, wp, oc):
    m, d = tok.shape
    n_tok = hp * wp
    b = m // n_tok
    kernel = functools.partial(_neck_kernel, hp=hp, wp=wp, oc=oc, eps=1e-6)
    return pl.pallas_call(
        kernel,
        out_shape=jax.ShapeDtypeStruct((m, oc), jnp.float32),
        grid=(b,),
        in_specs=[pl.BlockSpec((n_tok, d), lambda i: (i, 0)),
                  pl.BlockSpec((d, oc), lambda i: (0, 0)),
                  pl.BlockSpec((1, oc), lambda i: (0, 0)),
                  pl.BlockSpec((1, oc), lambda i: (0, 0)),
                  pl.BlockSpec((9, oc, oc), lambda i: (0, 0, 0)),
                  pl.BlockSpec((1, oc), lambda i: (0, 0)),
                  pl.BlockSpec((1, oc), lambda i: (0, 0))],
        out_specs=pl.BlockSpec((n_tok, oc), lambda i: (i, 0)),
        compiler_params=pltpu.CompilerParams(dimension_semantics=("parallel",)),
    )(tok, nparams["w1"], nparams["g1"], nparams["b1"],
      nparams["w2"], nparams["g2"], nparams["b2"])


# ----------------------------- model definition ----------------------------

def init_params(key, cfg):
    p, d, oc = cfg["patch"], cfg["embed_dim"], cfg["out_chans"]
    hp = cfg["input_size"][0] // p
    wp = cfg["input_size"][1] // p
    mlp = cfg["mlp_ratio"] * d
    keys = iter(jax.random.split(key, 64))

    def w(shape, scale=0.02):
        return scale * jax.random.normal(next(keys), shape, jnp.float32)

    params = dict(
        patch_w=w((p * p * 3, d)),             # conv(3->d, k=p, s=p) as matmul
        patch_b=jnp.zeros((d,), jnp.float32),
        pos_embed=w((hp * wp, d)),
        neck_w1=w((d, oc)),                    # 1x1 conv, no bias
        neck_g1=jnp.ones((oc,), jnp.float32),
        neck_b1=jnp.zeros((oc,), jnp.float32),
        neck_w2=w((3 * 3 * oc, oc)),           # 3x3 conv, no bias
        neck_g2=jnp.ones((oc,), jnp.float32),
        neck_b2=jnp.zeros((oc,), jnp.float32),
        blocks=[],
    )
    for _ in range(cfg["depth"]):
        params["blocks"].append(dict(
            ln1_g=jnp.ones((d,), jnp.float32), ln1_b=jnp.zeros((d,), jnp.float32),
            qkv_w=w((d, 3 * d)), qkv_b=jnp.zeros((3 * d,), jnp.float32),
            proj_w=w((d, d)), proj_b=jnp.zeros((d,), jnp.float32),
            ln2_g=jnp.ones((d,), jnp.float32), ln2_b=jnp.zeros((d,), jnp.float32),
            fc1_w=w((d, mlp)), fc1_b=jnp.zeros((mlp,), jnp.float32),
            fc2_w=w((mlp, d)), fc2_b=jnp.zeros((d,), jnp.float32),
        ))
    return params


def prepare_params(params, cfg, use_preprocess):
    """Kernel-friendly parameter layout: fold pixel normalization into the
    patch conv, split qkv/proj per head, cast matmul weights to bf16."""
    p, d, nh, oc = cfg["patch"], cfg["embed_dim"], cfg["num_heads"], cfg["out_chans"]
    dh = d // nh
    mlp = cfg["mlp_ratio"] * d
    wdt = jnp.bfloat16

    patch_w = params["patch_w"]
    patch_b = params["patch_b"]
    if use_preprocess:
        # conv((x - mean)/std) == conv'(x) with w' = w/std, b' = b - sum(w*mean/std)
        inv_std = jnp.tile(1.0 / PIXEL_STD, p * p)              # rows are (kh,kw,cin)
        mean_over_std = jnp.tile(PIXEL_MEAN / PIXEL_STD, p * p)
        patch_b = patch_b - jnp.sum(patch_w * mean_over_std[:, None], axis=0)
        patch_w = patch_w * inv_std[:, None]

    prep = dict(
        patch_w=patch_w,                        # keep f32 (raw-pixel dynamic range)
        patch_b=patch_b.reshape(1, d),
        pos_embed=params["pos_embed"],
        blocks=[],
        neck=dict(
            w1=params["neck_w1"].astype(wdt),
            g1=params["neck_g1"].reshape(1, oc),
            b1=params["neck_b1"].reshape(1, oc),
            w2=params["neck_w2"].reshape(9, oc, oc).astype(wdt),
            g2=params["neck_g2"].reshape(1, oc),
            b2=params["neck_b2"].reshape(1, oc),
        ),
    )
    for blk in params["blocks"]:
        # qkv columns are ordered (which, head, dh) -> per-(which,head) slabs
        qkv_w3 = jnp.transpose(blk["qkv_w"].reshape(d, 3, nh, dh),
                               (1, 2, 0, 3)).reshape(3 * nh, d, dh)
        qkv_b3 = blk["qkv_b"].reshape(3 * nh, 1, dh)
        proj_w3 = blk["proj_w"].reshape(nh, dh, d)        # rows are head-major
        prep["blocks"].append(dict(
            ln1_g=blk["ln1_g"].reshape(1, d), ln1_b=blk["ln1_b"].reshape(1, d),
            qkv_w3=qkv_w3.astype(wdt), qkv_b3=qkv_b3,
            proj_w3=proj_w3.astype(wdt), proj_b=blk["proj_b"].reshape(1, d),
            ln2_g=blk["ln2_g"].reshape(1, d), ln2_b=blk["ln2_b"].reshape(1, d),
            fc1_w=blk["fc1_w"].astype(wdt), fc1_b=blk["fc1_b"].reshape(1, mlp),
            fc2_w=blk["fc2_w"].astype(wdt), fc2_b=blk["fc2_b"].reshape(1, d),
        ))
    return prep


def onnx_encoder_forward(params, input_image, cfg, use_preprocess=True):
    p, d, nh, oc = cfg["patch"], cfg["embed_dim"], cfg["num_heads"], cfg["out_chans"]
    ht, wt = cfg["input_size"]
    hp, wp = ht // p, wt // p
    n_tok = hp * wp
    dh = d // nh

    prep = prepare_params(params, cfg, use_preprocess)

    if use_preprocess:
        # preprocess(): (x-mean)/std folded into patch weights; nearest resize
        # (PyTorch legacy 'nearest': src = floor(dst * in/out)) = pure gather.
        h0, w0, c = input_image.shape
        ri = jnp.floor(jnp.arange(ht) * (h0 / ht)).astype(jnp.int32)
        ci = jnp.floor(jnp.arange(wt) * (w0 / wt)).astype(jnp.int32)
        img = input_image.astype(jnp.float32)[ri][:, ci]          # (Ht, Wt, 3)
        b = 1
        patches = img.reshape(hp, p, wp, p, c).transpose(0, 2, 1, 3, 4)
        patches = patches.reshape(n_tok, p * p * c)
    else:
        x = input_image.astype(jnp.float32)                       # (B, 3, Ht, Wt)
        b = x.shape[0]
        xh = jnp.transpose(x, (0, 2, 3, 1))
        patches = xh.reshape(b, hp, p, wp, p, 3).transpose(0, 1, 3, 2, 4, 5)
        patches = patches.reshape(b * n_tok, p * p * 3)

    # patch embed conv (k=p, s=p) + bias + pos_embed, one fused kernel
    tok = patch_embed(patches, prep["patch_w"], prep["patch_b"],
                      prep["pos_embed"], n_tok)                   # (b*N, d)

    # transformer blocks: one fused pallas_call per block
    for blk in prep["blocks"]:
        tok = transformer_block(tok, blk, n_tok, nh, dh)

    # fused neck
    y = neck(tok, prep["neck"], hp, wp, oc)                       # (b*N, oc)

    # image_embeddings, NCHW: (B, out_chans, Hp, Wp)
    return y.reshape(b, hp, wp, oc).transpose(0, 3, 1, 2)


if __name__ == "__main__":
    key = jax.random.PRNGKey(0)
    k_img, k_param = jax.random.split(key)

    # raw HWC image (as expected by preprocess), small shape
    input_image = jax.random.uniform(k_img, (32, 48, 3), jnp.float32,
                                     minval=0.0, maxval=255.0)
    params = init_params(k_param, CFG)

    out = onnx_encoder_forward(params, input_image, CFG, use_preprocess=True)
    out = jax.block_until_ready(out)

    hp = CFG["input_size"][0] // CFG["patch"]
    wp = CFG["input_size"][1] // CFG["patch"]
    assert out.shape == (1, CFG["out_chans"], hp, wp), out.shape
    assert bool(jnp.all(jnp.isfinite(out)))
    print("KERNEL_OK")
</pallas_src>

<mosaic_0001>
module attributes {stable_mosaic.version = 11 : i64} {
  func.func @_patch_embed_kernel(%arg0: i32, %arg1: memref<16x768xf32, #tpu.memory_space<vmem>>, %arg2: memref<768x32xf32, #tpu.memory_space<vmem>>, %arg3: memref<1x32xf32, #tpu.memory_space<vmem>>, %arg4: memref<16x32xf32, #tpu.memory_space<vmem>>, %arg5: memref<16x32xf32, #tpu.memory_space<vmem>>) attributes {dimension_semantics = [#tpu.dimension_semantics<parallel>], iteration_bounds = array<i64: 1>, scalar_prefetch = 0 : i64, scratch_operands = 0 : i64, tpu.core_type = #tpu.core_type<tc>, window_params = [{transform_indices = @transform_0, window_bounds = array<i64: 16, 768>}, {pipeline_mode = #tpu.pipeline_mode<synchronous>, transform_indices = @transform_1, window_bounds = array<i64: 768, 32>}, {pipeline_mode = #tpu.pipeline_mode<synchronous>, transform_indices = @transform_2, window_bounds = array<i64: 1, 32>}, {pipeline_mode = #tpu.pipeline_mode<synchronous>, transform_indices = @transform_3, window_bounds = array<i64: 16, 32>}, {transform_indices = @transform_4, window_bounds = array<i64: 16, 32>}]} {
    %c0 = arith.constant 0 : index
    %c0_0 = arith.constant 0 : index
    %0 = vector.load %arg1[%c0, %c0_0] : memref<16x768xf32, #tpu.memory_space<vmem>>, vector<16x768xf32>
    %c0_1 = arith.constant 0 : index
    %c0_2 = arith.constant 0 : index
    %1 = vector.load %arg2[%c0_1, %c0_2] : memref<768x32xf32, #tpu.memory_space<vmem>>, vector<768x32xf32>
    %cst = arith.constant dense<0.000000e+00> : vector<16x32xf32>
    %2 = tpu.matmul %0, %1, %cst {dimension_numbers = #tpu.dot_dimension_numbers<[1], [0], [0], [1], [0, 0, 1, 1], [], []>} : vector<16x768xf32>, vector<768x32xf32>, vector<16x32xf32> -> vector<16x32xf32>
    %c0_3 = arith.constant 0 : index
    %c0_4 = arith.constant 0 : index
    %3 = vector.load %arg3[%c0_3, %c0_4] : memref<1x32xf32, #tpu.memory_space<vmem>>, vector<1x32xf32>
    %4 = vector.broadcast %3 : vector<1x32xf32> to vector<16x32xf32>
    %5 = arith.addf %2, %4 : vector<16x32xf32>
    %c0_5 = arith.constant 0 : index
    %c0_6 = arith.constant 0 : index
    %6 = vector.load %arg4[%c0_5, %c0_6] : memref<16x32xf32, #tpu.memory_space<vmem>>, vector<16x32xf32>
    %7 = arith.addf %5, %6 : vector<16x32xf32>
    %c0_7 = arith.constant 0 : index
    %c0_8 = arith.constant 0 : index
    %8 = vector.load %arg5[%c0_7, %c0_8] : memref<16x32xf32, #tpu.memory_space<vmem>>, vector<16x32xf32>
    tpu.vector_store %arg5[%c0_7, %c0_8], %7 {strides = array<i32>} : memref<16x32xf32, #tpu.memory_space<vmem>>, vector<16x32xf32>,
    return
  }
  func.func @transform_0(%arg0: i32) -> (i32, i32) {
    %c0_i32 = arith.constant 0 : i32
    %c0_i32_0 = arith.constant 0 : i32
    return %arg0, %c0_i32 : i32, i32
  }
  func.func @transform_1(%arg0: i32) -> (i32, i32) {
    %c0_i32 = arith.constant 0 : i32
    %c0_i32_0 = arith.constant 0 : i32
    %c0_i32_1 = arith.constant 0 : i32
    return %c0_i32, %c0_i32_0 : i32, i32
  }
  func.func @transform_2(%arg0: i32) -> (i32, i32) {
    %c0_i32 = arith.constant 0 : i32
    %c0_i32_0 = arith.constant 0 : i32
    %c0_i32_1 = arith.constant 0 : i32
    return %c0_i32, %c0_i32_0 : i32, i32
  }
  func.func @transform_3(%arg0: i32) -> (i32, i32) {
    %c0_i32 = arith.constant 0 : i32
    %c0_i32_0 = arith.constant 0 : i32
    %c0_i32_1 = arith.constant 0 : i32
    return %c0_i32, %c0_i32_0 : i32, i32
  }
  func.func @transform_4(%arg0: i32) -> (i32, i32) {
    %c0_i32 = arith.constant 0 : i32
    %c0_i32_0 = arith.constant 0 : i32
    return %arg0, %c0_i32 : i32, i32
  }
}

</mosaic_0001>

<bundles_post_ra>
// kernel: tpu_custom_call.1
= control target key start
LH: loop header
LB: loop body
LE: loop exit
PB: predicated region body
PF: predicated region fallthrough
CT: control target
= control target key end

     0   :  { %s917_s0 = inlined_call_operand.vmem [shape: f32[16,768], index: 0, kind: input, shape index: {}]   ;;  %s918_s1 = inlined_call_operand.vmem [shape: f32[768,32], index: 1, kind: input, shape index: {}]   ;;  %s919_s2 = inlined_call_operand.vmem [shape: f32[1,32], index: 2, kind: input, shape index: {}]   ;;  %s920_s3 = inlined_call_operand.vmem [shape: f32[16,32], index: 3, kind: input, shape index: {}]   ;;  %s921_s4 = inlined_call_operand.hbm [shape: f32[16,32], index: 4, kind: output, shape index: {}]  }
   0x1   :  { %v61_v0 = vld [vmem:[%s918_s1 + $0xf8] sm:$0xff]  ;;  %v60_v4 = vld [vmem:[%s918_s1 + $0xf0] sm:$0xff]  ;;  %v59_v8 = vld [vmem:[%s918_s1 + $0xe8] sm:$0xff] }
   0x2   :  { %v93_v1 = vld [vmem:[%s918_s1 + $0x1f8] sm:$0xff]  ;;  %382 = vmatprep.subr.mxu0 %v61_v0  ;;  %v92_v5 = vld [vmem:[%s918_s1 + $0x1f0] sm:$0xff]  ;;  %v91_v9 = vld [vmem:[%s918_s1 + $0x1e8] sm:$0xff] }
   0x3   :  { %v45_v2 = vld [vmem:[%s918_s1 + $0x78] sm:$0xff]  ;;  %420 = vmatprep.subr.mxu1 %v93_v1  ;;  %v44_v6 = vld [vmem:[%s918_s1 + $0x70] sm:$0xff]  ;;  %v43_v10 = vld [vmem:[%s918_s1 + $0x68] sm:$0xff] }
   0x4   :  { %v77_v3 = vld [vmem:[%s918_s1 + $0x178] sm:$0xff]  ;;  %383 = vmatpush3.msra.mxu0 %v45_v2  ;;  %v76_v7 = vld [vmem:[%s918_s1 + $0x170] sm:$0xff]  ;;  %v75_v11 = vld [vmem:[%s918_s1 + $0x168] sm:$0xff] }
   0x5   :  { %421 = vmatpush3.msra.mxu1 %v77_v3  ;;  %384 = vmatprep.subr.mxu0 %v60_v4  ;;  %v58_v12 = vld [vmem:[%s918_s1 + $0xe0] sm:$0xff]  ;;  %v57_v16 = vld [vmem:[%s918_s1 + $0xd8] sm:$0xff]  ;;  %v56_v20 = vld [vmem:[%s918_s1 + $0xd0] sm:$0xff] }
   0x6   :  { %422 = vmatprep.subr.mxu1 %v92_v5  ;;  %385 = vmatpush3.msra.mxu0 %v44_v6  ;;  %v90_v13 = vld [vmem:[%s918_s1 + $0x1e0] sm:$0xff]  ;;  %v89_v17 = vld [vmem:[%s918_s1 + $0x1d8] sm:$0xff]  ;;  %v88_v21 = vld [vmem:[%s918_s1 + $0x1d0] sm:$0xff] }
   0x7   :  { %423 = vmatpush3.msra.mxu1 %v76_v7  ;;  %386 = vmatprep.subr.mxu0 %v59_v8  ;;  %v42_v14 = vld [vmem:[%s918_s1 + $0x60] sm:$0xff]  ;;  %v41_v18 = vld [vmem:[%s918_s1 + $0x58] sm:$0xff]  ;;  %v40_v22 = vld [vmem:[%s918_s1 + $0x50] sm:$0xff] }
   0x8   :  { %424 = vmatprep.subr.mxu1 %v91_v9  ;;  %v74_v15 = vld [vmem:[%s918_s1 + $0x160] sm:$0xff]  ;;  %387 = vmatpush3.msra.mxu0 %v43_v10  ;;  %v73_v19 = vld [vmem:[%s918_s1 + $0x158] sm:$0xff]  ;;  %v72_v23 = vld [vmem:[%s918_s1 + $0x150] sm:$0xff] }
   0x9   :  { %425 = vmatpush3.msra.mxu1 %v75_v11  ;;  %388 = vmatprep.subr.mxu0 %v58_v12  ;;  %v55_v24 = vld [vmem:[%s918_s1 + $0xc8] sm:$0xff]  ;;  %v54_v28 = vld [vmem:[%s918_s1 + $0xc0] sm:$0xff]  ;;  %v53_v32 = vld [vmem:[%s918_s1 + $0xb8] sm:$0xff] }
   0xa   :  { %426 = vmatprep.subr.mxu1 %v90_v13  ;;  %389 = vmatpush3.msra.mxu0 %v42_v14  ;;  %v87_v25 = vld [vmem:[%s918_s1 + $0x1c8] sm:$0xff]  ;;  %v86_v29 = vld [vmem:[%s918_s1 + $0x1c0] sm:$0xff]  ;;  %v85_v33 = vld [vmem:[%s918_s1 + $0x1b8] sm:$0xff] }
   0xb   :  { %427 = vmatpush3.msra.mxu1 %v74_v15  ;;  %390 = vmatprep.subr.mxu0 %v57_v16  ;;  %v39_v26 = vld [vmem:[%s918_s1 + $0x48] sm:$0xff]  ;;  %v38_v30 = vld [vmem:[%s918_s1 + $0x40] sm:$0xff]  ;;  %v37_v34 = vld [vmem:[%s918_s1 + $0x38] sm:$0xff] }
   0xc   :  { %428 = vmatprep.subr.mxu1 %v89_v17  ;;  %391 = vmatpush3.msra.mxu0 %v41_v18  ;;  %v71_v27 = vld [vmem:[%s918_s1 + $0x148] sm:$0xff]  ;;  %v70_v31 = vld [vmem:[%s918_s1 + $0x140] sm:$0xff]  ;;  %v69_v35 = vld [vmem:[%s918_s1 + $0x138] sm:$0xff] }
   0xd   :  { %429 = vmatpush3.msra.mxu1 %v73_v19  ;;  %392 = vmatprep.subr.mxu0 %v56_v20  ;;  %v52_v36 = vld [vmem:[%s918_s1 + $0xb0] sm:$0xff]  ;;  %v51_v40 = vld [vmem:[%s918_s1 + $0xa8] sm:$0xff]  ;;  %v50_v44 = vld [vmem:[%s918_s1 + $0xa0] sm:$0xff] }
   0xe   :  { %430 = vmatprep.subr.mxu1 %v88_v21  ;;  %393 = vmatpush3.msra.mxu0 %v40_v22  ;;  %v84_v37 = vld [vmem:[%s918_s1 + $0x1b0] sm:$0xff]  ;;  %v83_v41 = vld [vmem:[%s918_s1 + $0x1a8] sm:$0xff]  ;;  %v82_v45 = vld [vmem:[%s918_s1 + $0x1a0] sm:$0xff] }
   0xf   :  { %431 = vmatpush3.msra.mxu1 %v72_v23  ;;  %394 = vmatprep.subr.mxu0 %v55_v24  ;;  %v36_v38 = vld [vmem:[%s918_s1 + $0x30] sm:$0xff]  ;;  %v35_v42 = vld [vmem:[%s918_s1 + $0x28] sm:$0xff]  ;;  %v34_v46 = vld [vmem:[%s918_s1 + $0x20] sm:$0xff] }
  0x10   :  { %432 = vmatprep.subr.mxu1 %v87_v25  ;;  %395 = vmatpush3.msra.mxu0 %v39_v26  ;;  %v68_v39 = vld [vmem:[%s918_s1 + $0x130] sm:$0xff]  ;;  %v67_v43 = vld [vmem:[%s918_s1 + $0x128] sm:$0xff]  ;;  %v66_v47 = vld [vmem:[%s918_s1 + $0x120] sm:$0xff] }
  0x11   :  { %433 = vmatpush3.msra.mxu1 %v71_v27  ;;  %396 = vmatprep.subr.mxu0 %v54_v28  ;;  %v49_v48 = vld [vmem:[%s918_s1 + $0x98] sm:$0xff]  ;;  %v48_v52 = vld [vmem:[%s918_s1 + $0x90] sm:$0xff]  ;;  %v47_v56 = vld [vmem:[%s918_s1 + $0x88] sm:$0xff] }
  0x12   :  { %434 = vmatprep.subr.mxu1 %v86_v29  ;;  %397 = vmatpush3.msra.mxu0 %v38_v30  ;;  %v81_v49 = vld [vmem:[%s918_s1 + $0x198] sm:$0xff]  ;;  %v80_v53 = vld [vmem:[%s918_s1 + $0x190] sm:$0xff]  ;;  %v79_v57 = vld [vmem:[%s918_s1 + $0x188] sm:$0xff] }
  0x13   :  { %435 = vmatpush3.msra.mxu1 %v70_v31  ;;  %398 = vmatprep.subr.mxu0 %v53_v32  ;;  %v33_v50 = vld [vmem:[%s918_s1 + $0x18] sm:$0xff]  ;;  %v32_v54 = vld [vmem:[%s918_s1 + $0x10] sm:$0xff]  ;;  %v31_v58 = vld [vmem:[%s918_s1 + $0x8] sm:$0xff] }
  0x14   :  { %436 = vmatprep.subr.mxu1 %v85_v33  ;;  %399 = vmatpush3.msra.mxu0 %v37_v34  ;;  %v65_v51 = vld [vmem:[%s918_s1 + $0x118] sm:$0xff]  ;;  %v64_v55 = vld [vmem:[%s918_s1 + $0x110] sm:$0xff]  ;;  %v63_v59 = vld [vmem:[%s918_s1 + $0x108] sm:$0xff] }
  0x15   :  { %437 = vmatpush3.msra.mxu1 %v69_v35  ;;  %400 = vmatprep.subr.mxu0 %v52_v36  ;;  %v46_v60 = vld [vmem:[%s918_s1 + $0x80] sm:$0xff]  ;;  %v19_v63 = vld [vmem:[%s917_s0 + $0x8] sm:$0xff]  ;;  %v21_v1 = vld [vmem:[%s917_s0 + $0x18] sm:$0xff] }
  0x16   :  { %438 = vmatprep.subr.mxu1 %v84_v37  ;;  %401 = vmatpush3.msra.mxu0 %v36_v38  ;;  %v78_v61 = vld [vmem:[%s918_s1 + $0x180] sm:$0xff]  ;;  %v20_v3 = vld [vmem:[%s917_s0 + $0x10] sm:$0xff]  ;;  %v125_v4 = vld [vmem:[%s918_s1 + $0x2f8] sm:$0xff] }
  0x17   :  { %439 = vmatpush3.msra.mxu1 %v68_v39  ;;  %402 = vmatprep.subr.mxu0 %v51_v40  ;;  %v30_v62 = vld [vmem:[%s918_s1] sm:$0xff]  ;;  %v109_v5 = vld [vmem:[%s918_s1 + $0x278] sm:$0xff]  ;;  %v124_v6 = vld [vmem:[%s918_s1 + $0x2f0] sm:$0xff] }
  0x18   :  { %440 = vmatprep.subr.mxu1 %v83_v41  ;;  %403 = vmatpush3.msra.mxu0 %v35_v42  ;;  %v62_v0 = vld [vmem:[%s918_s1 + $0x100] sm:$0xff]  ;;  %v108_v7 = vld [vmem:[%s918_s1 + $0x270] sm:$0xff]  ;;  %v123_v8 = vld [vmem:[%s918_s1 + $0x2e8] sm:$0xff] }
  0x19   :  { %441 = vmatpush3.msra.mxu1 %v67_v43  ;;  %404 = vmatprep.subr.mxu0 %v50_v44  ;;  %v18_v2 = vld [vmem:[%s917_s0] sm:$0xff] }
  0x1a   :  { %442 = vmatprep.subr.mxu1 %v82_v45  ;;  %405 = vmatpush3.msra.mxu0 %v34_v46 }
  0x1b   :  { %443 = vmatpush3.msra.mxu1 %v66_v47  ;;  %406 = vmatprep.subr.mxu0 %v49_v48 }
  0x1c   :  { %444 = vmatprep.subr.mxu1 %v81_v49  ;;  %407 = vmatpush3.msra.mxu0 %v33_v50 }
  0x1d   :  { %445 = vmatpush3.msra.mxu1 %v65_v51  ;;  %408 = vmatprep.subr.mxu0 %v48_v52 }
  0x1e   :  { %446 = vmatprep.subr.mxu1 %v80_v53  ;;  %409 = vmatpush3.msra.mxu0 %v32_v54 }
  0x1f   :  { %447 = vmatpush3.msra.mxu1 %v64_v55  ;;  %410 = vmatprep.subr.mxu0 %v47_v56 }
  0x20   :  { %448 = vmatprep.subr.mxu1 %v79_v57  ;;  %411 = vmatpush3.msra.mxu0 %v31_v58 }
  0x21   :  { %449 = vmatpush3.msra.mxu1 %v63_v59  ;;  %412 = vmatprep.subr.mxu0 %v46_v60 }
  0x22   :  { %450 = vmatprep.subr.mxu1 %v78_v61  ;;  %413 = vmatpush3.msra.mxu0 %v30_v62 }
  0x23   :  { %197 = vmatprep.mubr.f32.mxu0 %v19_v63  ;;  %451 = vmatpush3.msra.mxu1 %v62_v0 }
  0x24   :  { %272 = vmatprep.mubr.f32.mxu1 %v21_v1  ;;  %198 = vmatmul.mubr.f32.vlgmr.msra.gmra.mxu0 %v18_v2 }
  0x25   :  { %273 = vmatmul.mubr.f32.vlgmr.msra.gmra.mxu1 %v20_v3  ;;  %458 = vmatprep.subr.mxu0 %v125_v4 }
  0x26   :  { %496 = vmatprep.subr.mxu1 %v125_v4  ;;  %459 = vmatpush3.msra.mxu0 %v109_v5 }
  0x27   :  { %512 = vmatpush3.msra.mxu1 %v109_v5 }
  0x28   :  { %9 = vsyncpa [#allocation3], 0  ;;  %460 = vmatprep.subr.mxu0 %v124_v6  ;;  %497 = vmatprep.subr.mxu1 %v124_v6  ;;  %v107_v9 = vld [vmem:[%s918_s1 + $0x268] sm:$0xff]  ;;  %v122_v10 = vld [vmem:[%s918_s1 + $0x2e0] sm:$0xff]  ;;  %vm362_vm0 = vcmask 261120  }
  0x29   :  { %461 = vmatpush3.msra.mxu0 %v108_v7  ;;  %513 = vmatpush3.msra.mxu1 %v108_v7  ;;  %v106_v11 = vld [vmem:[%s918_s1 + $0x260] sm:$0xff]  ;;  %v121_v12 = vld [vmem:[%s918_s1 + $0x2d8] sm:$0xff]  ;;  %v120_v14 = vld [vmem:[%s918_s1 + $0x2d0] sm:$0xff] }
  0x2a   :  { %462 = vmatprep.subr.mxu0 %v123_v8  ;;  %498 = vmatprep.subr.mxu1 %v123_v8  ;;  %v105_v13 = vld [vmem:[%s918_s1 + $0x258] sm:$0xff]  ;;  %v104_v15 = vld [vmem:[%s918_s1 + $0x250] sm:$0xff]  ;;  %v119_v16 = vld [vmem:[%s918_s1 + $0x2c8] sm:$0xff] }
  0x2b   :  { %463 = vmatpush3.msra.mxu0 %v107_v9  ;;  %514 = vmatpush3.msra.mxu1 %v107_v9  ;;  %v103_v17 = vld [vmem:[%s918_s1 + $0x248] sm:$0xff]  ;;  %v118_v18 = vld [vmem:[%s918_s1 + $0x2c0] sm:$0xff]  ;;  %v117_v20 = vld [vmem:[%s918_s1 + $0x2b8] sm:$0xff] }
  0x2c   :  { %464 = vmatprep.subr.mxu0 %v122_v10  ;;  %499 = vmatprep.subr.mxu1 %v122_v10  ;;  %v102_v19 = vld [vmem:[%s918_s1 + $0x240] sm:$0xff]  ;;  %v101_v21 = vld [vmem:[%s918_s1 + $0x238] sm:$0xff]  ;;  %v116_v22 = vld [vmem:[%s918_s1 + $0x2b0] sm:$0xff] }
  0x2d   :  { %465 = vmatpush3.msra.mxu0 %v106_v11  ;;  %515 = vmatpush3.msra.mxu1 %v106_v11  ;;  %v100_v23 = vld [vmem:[%s918_s1 + $0x230] sm:$0xff]  ;;  %v115_v24 = vld [vmem:[%s918_s1 + $0x2a8] sm:$0xff]  ;;  %v114_v26 = vld [vmem:[%s918_s1 + $0x2a0] sm:$0xff] }
  0x2e   :  { %466 = vmatprep.subr.mxu0 %v121_v12  ;;  %500 = vmatprep.subr.mxu1 %v121_v12  ;;  %v99_v25 = vld [vmem:[%s918_s1 + $0x228] sm:$0xff]  ;;  %v25_v27 = vld [vmem:[%s917_s0 + $0x38] sm:$0xff]  ;;  %v98_v28 = vld [vmem:[%s918_s1 + $0x220] sm:$0xff] }
  0x2f   :  { %467 = vmatpush3.msra.mxu0 %v105_v13  ;;  %516 = vmatpush3.msra.mxu1 %v105_v13  ;;  %v24_v29 = vld [vmem:[%s917_s0 + $0x30] sm:$0xff]  ;;  %v113_v30 = vld [vmem:[%s918_s1 + $0x298] sm:$0xff]  ;;  %v27_v31 = vld [vmem:[%s917_s0 + $0x48] sm:$0xff] }
  0x30   :  { %468 = vmatprep.subr.mxu0 %v120_v14  ;;  %501 = vmatprep.subr.mxu1 %v120_v14  ;;  %v97_v32 = vld [vmem:[%s918_s1 + $0x218] sm:$0xff]  ;;  %v112_v33 = vld [vmem:[%s918_s1 + $0x290] sm:$0xff]  ;;  %v26_v34 = vld [vmem:[%s917_s0 + $0x40] sm:$0xff] }
  0x31   :  { %469 = vmatpush3.msra.mxu0 %v104_v15  ;;  %517 = vmatpush3.msra.mxu1 %v104_v15  ;;  %v96_v35 = vld [vmem:[%s918_s1 + $0x210] sm:$0xff]  ;;  %v111_v36 = vld [vmem:[%s918_s1 + $0x288] sm:$0xff]  ;;  %v110_v38 = vld [vmem:[%s918_s1 + $0x280] sm:$0xff] }
  0x32   :  { %470 = vmatprep.subr.mxu0 %v119_v16  ;;  %502 = vmatprep.subr.mxu1 %v119_v16  ;;  %v95_v37 = vld [vmem:[%s918_s1 + $0x208] sm:$0xff]  ;;  %v94_v39 = vld [vmem:[%s918_s1 + $0x200] sm:$0xff]  ;;  %v29_v41 = vld [vmem:[%s917_s0 + $0x58] sm:$0xff] }
  0x33   :  { %471 = vmatpush3.msra.mxu0 %v103_v17  ;;  %518 = vmatpush3.msra.mxu1 %v103_v17  ;;  %v23_v40 = vld [vmem:[%s917_s0 + $0x28] sm:$0xff]  ;;  %v22_v42 = vld [vmem:[%s917_s0 + $0x20] sm:$0xff]  ;;  %v28_v43 = vld [vmem:[%s917_s0 + $0x50] sm:$0xff]  ;;  %s553_s0 = smov [#allocation2]  }
  0x34   :  { %472 = vmatprep.subr.mxu0 %v118_v18  ;;  %503 = vmatprep.subr.mxu1 %v118_v18  ;;  %v381_v53 = vld [vmem:[%s919_s2] ss:$0 sm:$0xff]  ;;  %s370_s24 = sshll.u32 %s553_s0, 4  ;;  %v359_v4 = vld [vmem:[%s920_s3 + $0x8] sm:$0xff]  ;;  %s371_s24 = int_to_ptr.vmem [resolvable:$true] %s370_s24 }
  0x35   :  { %473 = vmatpush3.msra.mxu0 %v102_v19  ;;  %519 = vmatpush3.msra.mxu1 %v102_v19  ;;  %v358_v3 = vld [vmem:[%s920_s3] sm:$0xff]  ;;  %s531_s28 = scalar_lea.vmem %s371_s24, 256  ;;  %p536_p1 = scmp.lt.s32.totalorder %s371_s24, %s371_s24 }
  0x36   :  { %474 = vmatprep.subr.mxu0 %v117_v20  ;;  %504 = vmatprep.subr.mxu1 %v117_v20  ;;  %p532_p0 = scmp.ne.s32.totalorder %s371_s24, %s531_s28  ;;  %p537_p2 = scmp.lt.s32.totalorder %s531_s28, %s531_s28 }
  0x37   :  { %475 = vmatpush3.msra.mxu0 %v101_v21  ;;  %520 = vmatpush3.msra.mxu1 %v101_v21 }
  0x38   :  { %476 = vmatprep.subr.mxu0 %v116_v22  ;;  %505 = vmatprep.subr.mxu1 %v116_v22  ;;  %p538_p3 = por %p537_p2, %p536_p1 }
  0x39   :  { %477 = vmatpush3.msra.mxu0 %v100_v23  ;;  %521 = vmatpush3.msra.mxu1 %v100_v23 }
  0x3a   :  { %478 = vmatprep.subr.mxu0 %v115_v24  ;;  %506 = vmatprep.subr.mxu1 %v115_v24  ;;  %p539_p4 = pnand %p538_p3, %p532_p0 }
  0x3b   :  { %479 = vmatpush3.msra.mxu0 %v99_v25  ;;  %522 = vmatpush3.msra.mxu1 %v99_v25 }
  0x3c   :  { %480 = vmatprep.subr.mxu0 %v114_v26  ;;  %507 = vmatprep.subr.mxu1 %v114_v26 }
  0x3d   :  { %202 = vmatprep.mubr.f32.mxu0 %v25_v27  ;;  %481 = vmatpush3.msra.mxu0 %v98_v28 }
  0x3e   :  { %523 = vmatpush3.msra.mxu1 %v98_v28  ;;  %203 = vmatmul.mubr.f32.gmra.mxu0 %v24_v29 }
  0x3f   :  { %482 = vmatprep.subr.mxu0 %v113_v30  ;;  %508 = vmatprep.subr.mxu1 %v113_v30 }
  0x40   :  { %277 = vmatprep.mubr.f32.mxu1 %v27_v31  ;;  %483 = vmatpush3.msra.mxu0 %v97_v32 }
  0x41   :  { %524 = vmatpush3.msra.mxu1 %v97_v32  ;;  %484 = vmatprep.subr.mxu0 %v112_v33 }
  0x42   :  { %278 = vmatmul.mubr.f32.gmra.mxu1 %v26_v34  ;;  %509 = vmatprep.subr.mxu1 %v112_v33 }
  0x43   :  { %485 = vmatpush3.msra.mxu0 %v96_v35  ;;  %525 = vmatpush3.msra.mxu1 %v96_v35 }
  0x44   :  { %486 = vmatprep.subr.mxu0 %v111_v36  ;;  %510 = vmatprep.subr.mxu1 %v111_v36 }
  0x45   :  { %487 = vmatpush3.msra.mxu0 %v95_v37  ;;  %526 = vmatpush3.msra.mxu1 %v95_v37 }
  0x46   :  { %488 = vmatprep.subr.mxu0 %v110_v38  ;;  %511 = vmatprep.subr.mxu1 %v110_v38 }
  0x47   :  { %489 = vmatpush3.msra.mxu0 %v94_v39  ;;  %527 = vmatpush3.msra.mxu1 %v94_v39 }
  0x48   :  { %347 = vmatprep.mubr.f32.mxu0 %v23_v40  ;;  %352 = vmatprep.mubr.f32.mxu1 %v29_v41 }
  0x49   :  { %348 = vmatmul.mubr.f32.vlgmr.msra.gmra.mxu0 %v22_v42  ;;  %353 = vmatmul.mubr.f32.vlgmr.msra.gmra.mxu1 %v28_v43 }
  0xe4   :  { %v414_v44 = vpop.f32.mrf.mxu0 }
  0xe5   :  { %v452_v45 = vpop.f32.mrf.mxu1 }
  0xe6   :  { %v415_v46 = vpop.f32.mrf.mxu0 }
  0xe7   :  { %v453_v48 = vpop.f32.mrf.mxu1  ;;  %v416_v51 = vadd.f32 %v415_v46, %v414_v44 }
  0xe8   :  { %v454_v60 = vadd.f32 %v453_v48, %v452_v45 }
  0xe9   :  { %v200_v55 = vadd.f32 %v416_v51, %v381_v53 }
  0xeb   :  { %v275_v63 = vadd.f32 %v454_v60, %v200_v55 }
  0xfe   :  { %v417_v47 = vpop.f32.mrf.mxu0 }
 0x100   :  { %v418_v49 = vpop.f32.mrf.mxu0 }
 0x101   :  { %v419_v52 = vadd.f32 %v418_v49, %v417_v47 }
 0x102   :  { %v455_v50 = vpop.f32.mrf.mxu1 }
 0x103   :  { %v205_v56 = vadd.f32 %v419_v52, %v381_v53 }
 0x104   :  { %v456_v54 = vpop.f32.mrf.mxu1 }
 0x105   :  { %v457_v57 = vadd.f32 %v456_v54, %v455_v50 }
 0x107   :  { %v280_v0 = vadd.f32 %v457_v57, %v205_v56 }
 0x109   :  { %v490_v58 = vpop.f32.mrf.mxu0  ;;  %v493_v59 = vpop.f32.mrf.mxu1 }
 0x10b   :  { %v491_v61 = vpop.f32.mrf.mxu0  ;;  %v494_v62 = vpop.f32.mrf.mxu1 }
 0x10c   :  { %v492_v1 = vadd.f32 %v491_v61, %v490_v58  ;;  %v495_v2 = vadd.f32 %v494_v62, %v493_v59 }
 0x10e   :  { %v350_v5 = vadd.f32 %v492_v1, %v275_v63  ;;  %v355_v6 = vadd.f32 %v495_v2, %v280_v0 }
 0x110   :  { %v360_v7 = vadd.f32 %v358_v3, %v350_v5  ;;  %v361_v8 = vadd.f32 %v359_v4, %v355_v6 }
 0x112   :  { %363 = vst.msk [vmem:[#allocation2] sm:$0xff] %vm362_vm0, %v360_v7  ;;  %364 = vst.msk [vmem:[#allocation2 + $0x8] sm:$0xff] %vm362_vm0, %v361_v8 }
 0x113   :  { %542 = shalt.err (!%p539_p4)
}
 0x114   :  { %s554_s29 = smov 128   ;;  %s555_s30 = smov 8  }
 0x115   :  { %376 = dma.vmem_to_hbm [thread:$0]  %s371_s24, 256, %s921_s4, [#allocation3], %s554_s29, %s554_s29, %s555_s30  }
 0x116   :  { %551 = dma.done.wait [#allocation3], 256  }
 0x117   :  { %552 = vsyncadd [#allocation3], 4294967040 }
 0x118   :  { %380 = vsyncpa [#allocation3], 1 }

</bundles_post_ra>
